<compile_context>
chip_gen: v7x
topology: tpu7x:2x2x1
jax: 0.10.0
libtpu: 0.0.40
codegen_flags: <defaults>
</compile_context>

<pallas_src>
import math

import jax
import jax.numpy as jnp
from jax import lax
from jax.experimental import pallas as pl
from jax.experimental.pallas import tpu as pltpu


_UNROLL_MAX = 64  # fully unroll in-kernel loops with at most this many trips


def _loop(n, body):
    """Run body(i) for i in [0, n).  Small static trip counts are fully
    unrolled; longer ones use a partially unrolled fori_loop."""
    if n <= _UNROLL_MAX:
        for i in range(n):
            body(i)
    else:
        def step(i, carry):
            body(i)
            return carry
        lax.fori_loop(0, n, step, 0, unroll=8)


# ----------------------------------------------------------------------------
# Kernels
# ----------------------------------------------------------------------------
def _swap_noninner_kernel(x_ref, o_ref):
    """(t_outer, A, tmid, B, inner) -> (t_outer, B, tmid, A, inner).

    Lane dim untouched.  Store-dense order: strided (A, inner) load feeding a
    dense, unmasked (A, inner) multi-sublane store per step.
    """
    t_outer, _, tmid, b, _ = x_ref.shape
    mb = tmid * b

    def step(idx):
        oo = idx // mb
        r = idx % mb
        m = r // b
        bb = r % b
        o_ref[oo, bb, m, :, :] = x_ref[oo, :, m, bb, :]

    _loop(t_outer * mb, step)


def _swap_lastdim_kernel(x_ref, o_ref):
    """(t_outer, A, tmid, B) -> (t_outer, B, tmid, A); lane dim participates.

    One 2-D minor-dims (XLU) transpose per step; unrolling lets consecutive
    XLU pushes / loads / stores overlap.
    """
    t_outer, _, tmid, _ = x_ref.shape

    def step(idx):
        oo = idx // tmid
        m = idx % tmid
        o_ref[oo, :, m, :] = x_ref[oo, :, m, :].T

    _loop(t_outer * tmid, step)


# ----------------------------------------------------------------------------
# Wrapper helpers
# ----------------------------------------------------------------------------
def _vmem_capacity_bytes():
    try:
        return int(pltpu.get_tpu_info().vmem_capacity_bytes)
    except Exception:
        return 64 * 1024 * 1024  # conservative (v7x-sized) fallback


def _fit_tile(extent, unit_bytes, budget, multiple=1):
    """Largest tile <= extent whose block fits `budget`.  When the tile is
    smaller than the extent it is a multiple of `multiple` (sublane alignment
    for a tiled second-minor dim); the full extent is always legal."""
    t = int(budget // max(1, unit_bytes))
    if t >= extent:
        return extent
    if multiple > 1:
        t = (t // multiple) * multiple
        if t == 0:
            return extent if extent <= multiple else multiple
    return max(1, t)


# ----------------------------------------------------------------------------
# Wrapper
# ----------------------------------------------------------------------------
def swap_dim(x, dim1, dim2, *, block_budget_bytes=None):
    """Pallas equivalent of torch.Tensor.transpose(dim1, dim2)."""
    ndim = x.ndim
    d1 = dim1 if dim1 >= 0 else dim1 + ndim
    d2 = dim2 if dim2 >= 0 else dim2 + ndim
    assert 0 <= d1 < ndim and 0 <= d2 < ndim, (dim1, dim2, x.shape)
    if d1 == d2:
        return x
    if d1 > d2:
        d1, d2 = d2, d1

    shape = x.shape
    out_shape = list(shape)
    out_shape[d1], out_shape[d2] = out_shape[d2], out_shape[d1]
    out_shape = tuple(out_shape)

    outer = math.prod(shape[:d1])
    a = shape[d1]
    mid = math.prod(shape[d1 + 1:d2])
    b = shape[d2]
    inner = math.prod(shape[d2 + 1:])
    itemsize = jnp.dtype(x.dtype).itemsize

    # Generation-aware block budget: 2 double-buffered blocks (in + out) must
    # stay well inside VMEM -> 16 MiB blocks on 128-MiB chips (v5e/v6e),
    # 8 MiB on v7x (64 MiB VMEM).
    vmem_cap = _vmem_capacity_bytes()
    budget = (block_budget_bytes if block_budget_bytes is not None
              else min(vmem_cap // 8, 16 << 20))

    if inner == 1:
        base = a * b * itemsize
        # tmid is the second-minor block dim: if tiled it must be a multiple
        # of the dtype's sublane packing (8 f32, 16 bf16, 32 int8/fp8).
        sub_mult = max(8, 32 // max(1, itemsize))
        tmid = _fit_tile(mid, base, budget, multiple=sub_mult)
    else:
        base = a * b * inner * itemsize
        tmid = _fit_tile(mid, base, budget, multiple=1)
    t_outer = _fit_tile(outer, tmid * base, budget, multiple=1)

    # Keep >= 2 grid steps when possible so both v7x TensorCores get work.
    if pl.cdiv(outer, t_outer) * pl.cdiv(mid, tmid) < 2:
        if outer >= 2:
            t_outer = pl.cdiv(outer, 2)
        elif mid >= 2 and inner > 1:
            tmid = pl.cdiv(mid, 2)

    grid = (pl.cdiv(outer, t_outer), pl.cdiv(mid, tmid))

    if inner == 1:
        xc = x.reshape(outer, a, mid, b)
        in_spec = pl.BlockSpec((t_outer, a, tmid, b), lambda o, m: (o, 0, m, 0))
        out_spec = pl.BlockSpec((t_outer, b, tmid, a), lambda o, m: (o, 0, m, 0))
        out_canon = (outer, b, mid, a)
        kernel = _swap_lastdim_kernel
    else:
        xc = x.reshape(outer, a, mid, b, inner)
        in_spec = pl.BlockSpec((t_outer, a, tmid, b, inner),
                               lambda o, m: (o, 0, m, 0, 0))
        out_spec = pl.BlockSpec((t_outer, b, tmid, a, inner),
                                lambda o, m: (o, 0, m, 0, 0))
        out_canon = (outer, b, mid, a, inner)
        kernel = _swap_noninner_kernel

    block_bytes = t_outer * tmid * base
    needed = 4 * block_bytes + (4 << 20)       # 2 buffers x (in + out) + slack
    vmem_limit = int(min(max(needed, 32 << 20), (vmem_cap * 9) // 10))

    y = pl.pallas_call(
        kernel,
        out_shape=jax.ShapeDtypeStruct(out_canon, x.dtype),
        grid=grid,
        in_specs=[in_spec],
        out_specs=out_spec,
        compiler_params=pltpu.CompilerParams(
            dimension_semantics=("parallel", "parallel"),
            vmem_limit_bytes=vmem_limit),
    )(xc)
    return y.reshape(out_shape)


# ----------------------------------------------------------------------------
# Self-test
# ----------------------------------------------------------------------------
if __name__ == "__main__":
    key = jax.random.PRNGKey(0)
    # NCHW-style input: SwapDim is "used to convert C dim to H or W".
    x = jax.random.normal(key, (2, 4, 16, 16), jnp.float32)

    cases = [(1, 2), (1, 3), (2, 3), (0, 2), (-3, -1)]
    for d1, d2 in cases:
        y = swap_dim(x, d1, d2)
        y_ref = jnp.swapaxes(x, d1, d2)
        jax.block_until_ready(y)
        assert y.shape == y_ref.shape, (d1, d2, y.shape, y_ref.shape)
        assert bool(jnp.array_equal(y, y_ref)), (d1, d2)

    # 3-D feature map and a plain 2-D transpose.
    x3 = jax.random.normal(jax.random.fold_in(key, 1), (2, 8, 128), jnp.float32)
    y3 = swap_dim(x3, 1, 2)
    jax.block_until_ready(y3)
    assert bool(jnp.array_equal(y3, jnp.swapaxes(x3, 1, 2)))

    x2 = jax.random.normal(jax.random.fold_in(key, 2), (16, 24), jnp.float32)
    y2 = swap_dim(x2, 0, 1)
    jax.block_until_ready(y2)
    assert bool(jnp.array_equal(y2, x2.T))

    # bf16 (exercises the dtype-aware sublane multiple).
    xb = jax.random.normal(jax.random.fold_in(key, 3),
                           (2, 4, 16, 16)).astype(jnp.bfloat16)
    yb = swap_dim(xb, 1, 3)
    jax.block_until_ready(yb)
    assert bool(jnp.array_equal(yb, jnp.swapaxes(xb, 1, 3)))

    # Odd (non-dividing) outer extent -> partial edge blocks via pl.cdiv grid.
    x5 = jax.random.normal(jax.random.fold_in(key, 4), (3, 5, 16, 16),
                           jnp.float32)
    for d1, d2 in [(1, 2), (1, 3)]:
        y5 = swap_dim(x5, d1, d2)
        jax.block_until_ready(y5)
        assert bool(jnp.array_equal(y5, jnp.swapaxes(x5, d1, d2))), (d1, d2)

    # Identity swap (dim1 == dim2) is a no-op, as in torch.transpose.
    assert bool(jnp.array_equal(swap_dim(x, 2, 2), x))

    print("KERNEL_OK")
</pallas_src>

<mosaic_0001>
module attributes {stable_mosaic.version = 11 : i64} {
  func.func @_swap_noninner_kernel(%arg0: i32, %arg1: i32, %arg2: memref<1x4x1x16x16xf32, #tpu.memory_space<vmem>>, %arg3: memref<1x16x1x4x16xf32, #tpu.memory_space<vmem>>) attributes {dimension_semantics = [#tpu.dimension_semantics<parallel>, #tpu.dimension_semantics<parallel>], iteration_bounds = array<i64: 2, 1>, scalar_prefetch = 0 : i64, scratch_operands = 0 : i64, tpu.core_type = #tpu.core_type<tc>, window_params = [{transform_indices = @transform_0, window_bounds = array<i64: 1, 4, 1, 16, 16>}, {transform_indices = @transform_1, window_bounds = array<i64: 1, 16, 1, 4, 16>}]} {
    %c0 = arith.constant 0 : index
    %c0_0 = arith.constant 0 : index
    %c0_1 = arith.constant 0 : index
    %c0_2 = arith.constant 0 : index
    %c0_3 = arith.constant 0 : index
    %0 = vector.load %arg2[%c0, %c0_0, %c0_1, %c0_2, %c0_3] : memref<1x4x1x16x16xf32, #tpu.memory_space<vmem>>, vector<1x4x1x1x16xf32>
    %1 = vector.shape_cast %0 : vector<1x4x1x1x16xf32> to vector<4x16xf32>
    %c0_4 = arith.constant 0 : index
    %c0_5 = arith.constant 0 : index
    %c0_6 = arith.constant 0 : index
    %c0_7 = arith.constant 0 : index
    %c0_8 = arith.constant 0 : index
    %2 = vector.load %arg3[%c0_4, %c0_5, %c0_6, %c0_7, %c0_8] : memref<1x16x1x4x16xf32, #tpu.memory_space<vmem>>, vector<1x1x1x4x16xf32>
    %3 = vector.shape_cast %2 : vector<1x1x1x4x16xf32> to vector<4x16xf32>
    %4 = vector.shape_cast %1 : vector<4x16xf32> to vector<1x1x1x4x16xf32>
    tpu.vector_store %arg3[%c0_4, %c0_5, %c0_6, %c0_7, %c0_8], %4 {strides = array<i32>} : memref<1x16x1x4x16xf32, #tpu.memory_space<vmem>>, vector<1x1x1x4x16xf32>,
    %c0_9 = arith.constant 0 : index
    %c0_10 = arith.constant 0 : index
    %c0_11 = arith.constant 0 : index
    %c1 = arith.constant 1 : index
    %c0_12 = arith.constant 0 : index
    %5 = vector.load %arg2[%c0_9, %c0_10, %c0_11, %c1, %c0_12] : memref<1x4x1x16x16xf32, #tpu.memory_space<vmem>>, vector<1x4x1x1x16xf32>
    %6 = vector.shape_cast %5 : vector<1x4x1x1x16xf32> to vector<4x16xf32>
    %c0_13 = arith.constant 0 : index
    %c1_14 = arith.constant 1 : index
    %c0_15 = arith.constant 0 : index
    %c0_16 = arith.constant 0 : index
    %c0_17 = arith.constant 0 : index
    %7 = vector.load %arg3[%c0_13, %c1_14, %c0_15, %c0_16, %c0_17] : memref<1x16x1x4x16xf32, #tpu.memory_space<vmem>>, vector<1x1x1x4x16xf32>
    %8 = vector.shape_cast %7 : vector<1x1x1x4x16xf32> to vector<4x16xf32>
    %9 = vector.shape_cast %6 : vector<4x16xf32> to vector<1x1x1x4x16xf32>
    tpu.vector_store %arg3[%c0_13, %c1_14, %c0_15, %c0_16, %c0_17], %9 {strides = array<i32>} : memref<1x16x1x4x16xf32, #tpu.memory_space<vmem>>, vector<1x1x1x4x16xf32>,
    %c0_18 = arith.constant 0 : index
    %c0_19 = arith.constant 0 : index
    %c0_20 = arith.constant 0 : index
    %c2 = arith.constant 2 : index
    %c0_21 = arith.constant 0 : index
    %10 = vector.load %arg2[%c0_18, %c0_19, %c0_20, %c2, %c0_21] : memref<1x4x1x16x16xf32, #tpu.memory_space<vmem>>, vector<1x4x1x1x16xf32>
    %11 = vector.shape_cast %10 : vector<1x4x1x1x16xf32> to vector<4x16xf32>
    %c0_22 = arith.constant 0 : index
    %c2_23 = arith.constant 2 : index
    %c0_24 = arith.constant 0 : index
    %c0_25 = arith.constant 0 : index
    %c0_26 = arith.constant 0 : index
    %12 = vector.load %arg3[%c0_22, %c2_23, %c0_24, %c0_25, %c0_26] : memref<1x16x1x4x16xf32, #tpu.memory_space<vmem>>, vector<1x1x1x4x16xf32>
    %13 = vector.shape_cast %12 : vector<1x1x1x4x16xf32> to vector<4x16xf32>
    %14 = vector.shape_cast %11 : vector<4x16xf32> to vector<1x1x1x4x16xf32>
    tpu.vector_store %arg3[%c0_22, %c2_23, %c0_24, %c0_25, %c0_26], %14 {strides = array<i32>} : memref<1x16x1x4x16xf32, #tpu.memory_space<vmem>>, vector<1x1x1x4x16xf32>,
    %c0_27 = arith.constant 0 : index
    %c0_28 = arith.constant 0 : index
    %c0_29 = arith.constant 0 : index
    %c3 = arith.constant 3 : index
    %c0_30 = arith.constant 0 : index
    %15 = vector.load %arg2[%c0_27, %c0_28, %c0_29, %c3, %c0_30] : memref<1x4x1x16x16xf32, #tpu.memory_space<vmem>>, vector<1x4x1x1x16xf32>
    %16 = vector.shape_cast %15 : vector<1x4x1x1x16xf32> to vector<4x16xf32>
    %c0_31 = arith.constant 0 : index
    %c3_32 = arith.constant 3 : index
    %c0_33 = arith.constant 0 : index
    %c0_34 = arith.constant 0 : index
    %c0_35 = arith.constant 0 : index
    %17 = vector.load %arg3[%c0_31, %c3_32, %c0_33, %c0_34, %c0_35] : memref<1x16x1x4x16xf32, #tpu.memory_space<vmem>>, vector<1x1x1x4x16xf32>
    %18 = vector.shape_cast %17 : vector<1x1x1x4x16xf32> to vector<4x16xf32>
    %19 = vector.shape_cast %16 : vector<4x16xf32> to vector<1x1x1x4x16xf32>
    tpu.vector_store %arg3[%c0_31, %c3_32, %c0_33, %c0_34, %c0_35], %19 {strides = array<i32>} : memref<1x16x1x4x16xf32, #tpu.memory_space<vmem>>, vector<1x1x1x4x16xf32>,
    %c0_36 = arith.constant 0 : index
    %c0_37 = arith.constant 0 : index
    %c0_38 = arith.constant 0 : index
    %c4 = arith.constant 4 : index
    %c0_39 = arith.constant 0 : index
    %20 = vector.load %arg2[%c0_36, %c0_37, %c0_38, %c4, %c0_39] : memref<1x4x1x16x16xf32, #tpu.memory_space<vmem>>, vector<1x4x1x1x16xf32>
    %21 = vector.shape_cast %20 : vector<1x4x1x1x16xf32> to vector<4x16xf32>
    %c0_40 = arith.constant 0 : index
    %c4_41 = arith.constant 4 : index
    %c0_42 = arith.constant 0 : index
    %c0_43 = arith.constant 0 : index
    %c0_44 = arith.constant 0 : index
    %22 = vector.load %arg3[%c0_40, %c4_41, %c0_42, %c0_43, %c0_44] : memref<1x16x1x4x16xf32, #tpu.memory_space<vmem>>, vector<1x1x1x4x16xf32>
    %23 = vector.shape_cast %22 : vector<1x1x1x4x16xf32> to vector<4x16xf32>
    %24 = vector.shape_cast %21 : vector<4x16xf32> to vector<1x1x1x4x16xf32>
    tpu.vector_store %arg3[%c0_40, %c4_41, %c0_42, %c0_43, %c0_44], %24 {strides = array<i32>} : memref<1x16x1x4x16xf32, #tpu.memory_space<vmem>>, vector<1x1x1x4x16xf32>,
    %c0_45 = arith.constant 0 : index
    %c0_46 = arith.constant 0 : index
    %c0_47 = arith.constant 0 : index
    %c5 = arith.constant 5 : index
    %c0_48 = arith.constant 0 : index
    %25 = vector.load %arg2[%c0_45, %c0_46, %c0_47, %c5, %c0_48] : memref<1x4x1x16x16xf32, #tpu.memory_space<vmem>>, vector<1x4x1x1x16xf32>
    %26 = vector.shape_cast %25 : vector<1x4x1x1x16xf32> to vector<4x16xf32>
    %c0_49 = arith.constant 0 : index
    %c5_50 = arith.constant 5 : index
    %c0_51 = arith.constant 0 : index
    %c0_52 = arith.constant 0 : index
    %c0_53 = arith.constant 0 : index
    %27 = vector.load %arg3[%c0_49, %c5_50, %c0_51, %c0_52, %c0_53] : memref<1x16x1x4x16xf32, #tpu.memory_space<vmem>>, vector<1x1x1x4x16xf32>
    %28 = vector.shape_cast %27 : vector<1x1x1x4x16xf32> to vector<4x16xf32>
    %29 = vector.shape_cast %26 : vector<4x16xf32> to vector<1x1x1x4x16xf32>
    tpu.vector_store %arg3[%c0_49, %c5_50, %c0_51, %c0_52, %c0_53], %29 {strides = array<i32>} : memref<1x16x1x4x16xf32, #tpu.memory_space<vmem>>, vector<1x1x1x4x16xf32>,
    %c0_54 = arith.constant 0 : index
    %c0_55 = arith.constant 0 : index
    %c0_56 = arith.constant 0 : index
    %c6 = arith.constant 6 : index
    %c0_57 = arith.constant 0 : index
    %30 = vector.load %arg2[%c0_54, %c0_55, %c0_56, %c6, %c0_57] : memref<1x4x1x16x16xf32, #tpu.memory_space<vmem>>, vector<1x4x1x1x16xf32>
    %31 = vector.shape_cast %30 : vector<1x4x1x1x16xf32> to vector<4x16xf32>
    %c0_58 = arith.constant 0 : index
    %c6_59 = arith.constant 6 : index
    %c0_60 = arith.constant 0 : index
    %c0_61 = arith.constant 0 : index
    %c0_62 = arith.constant 0 : index
    %32 = vector.load %arg3[%c0_58, %c6_59, %c0_60, %c0_61, %c0_62] : memref<1x16x1x4x16xf32, #tpu.memory_space<vmem>>, vector<1x1x1x4x16xf32>
    %33 = vector.shape_cast %32 : vector<1x1x1x4x16xf32> to vector<4x16xf32>
    %34 = vector.shape_cast %31 : vector<4x16xf32> to vector<1x1x1x4x16xf32>
    tpu.vector_store %arg3[%c0_58, %c6_59, %c0_60, %c0_61, %c0_62], %34 {strides = array<i32>} : memref<1x16x1x4x16xf32, #tpu.memory_space<vmem>>, vector<1x1x1x4x16xf32>,
    %c0_63 = arith.constant 0 : index
    %c0_64 = arith.constant 0 : index
    %c0_65 = arith.constant 0 : index
    %c7 = arith.constant 7 : index
    %c0_66 = arith.constant 0 : index
    %35 = vector.load %arg2[%c0_63, %c0_64, %c0_65, %c7, %c0_66] : memref<1x4x1x16x16xf32, #tpu.memory_space<vmem>>, vector<1x4x1x1x16xf32>
    %36 = vector.shape_cast %35 : vector<1x4x1x1x16xf32> to vector<4x16xf32>
    %c0_67 = arith.constant 0 : index
    %c7_68 = arith.constant 7 : index
    %c0_69 = arith.constant 0 : index
    %c0_70 = arith.constant 0 : index
    %c0_71 = arith.constant 0 : index
    %37 = vector.load %arg3[%c0_67, %c7_68, %c0_69, %c0_70, %c0_71] : memref<1x16x1x4x16xf32, #tpu.memory_space<vmem>>, vector<1x1x1x4x16xf32>
    %38 = vector.shape_cast %37 : vector<1x1x1x4x16xf32> to vector<4x16xf32>
    %39 = vector.shape_cast %36 : vector<4x16xf32> to vector<1x1x1x4x16xf32>
    tpu.vector_store %arg3[%c0_67, %c7_68, %c0_69, %c0_70, %c0_71], %39 {strides = array<i32>} : memref<1x16x1x4x16xf32, #tpu.memory_space<vmem>>, vector<1x1x1x4x16xf32>,
    %c0_72 = arith.constant 0 : index
    %c0_73 = arith.constant 0 : index
    %c0_74 = arith.constant 0 : index
    %c8 = arith.constant 8 : index
    %c0_75 = arith.constant 0 : index
    %40 = vector.load %arg2[%c0_72, %c0_73, %c0_74, %c8, %c0_75] : memref<1x4x1x16x16xf32, #tpu.memory_space<vmem>>, vector<1x4x1x1x16xf32>
    %41 = vector.shape_cast %40 : vector<1x4x1x1x16xf32> to vector<4x16xf32>
    %c0_76 = arith.constant 0 : index
    %c8_77 = arith.constant 8 : index
    %c0_78 = arith.constant 0 : index
    %c0_79 = arith.constant 0 : index
    %c0_80 = arith.constant 0 : index
    %42 = vector.load %arg3[%c0_76, %c8_77, %c0_78, %c0_79, %c0_80] : memref<1x16x1x4x16xf32, #tpu.memory_space<vmem>>, vector<1x1x1x4x16xf32>
    %43 = vector.shape_cast %42 : vector<1x1x1x4x16xf32> to vector<4x16xf32>
    %44 = vector.shape_cast %41 : vector<4x16xf32> to vector<1x1x1x4x16xf32>
    tpu.vector_store %arg3[%c0_76, %c8_77, %c0_78, %c0_79, %c0_80], %44 {strides = array<i32>} : memref<1x16x1x4x16xf32, #tpu.memory_space<vmem>>, vector<1x1x1x4x16xf32>,
    %c0_81 = arith.constant 0 : index
    %c0_82 = arith.constant 0 : index
    %c0_83 = arith.constant 0 : index
    %c9 = arith.constant 9 : index
    %c0_84 = arith.constant 0 : index
    %45 = vector.load %arg2[%c0_81, %c0_82, %c0_83, %c9, %c0_84] : memref<1x4x1x16x16xf32, #tpu.memory_space<vmem>>, vector<1x4x1x1x16xf32>
    %46 = vector.shape_cast %45 : vector<1x4x1x1x16xf32> to vector<4x16xf32>
    %c0_85 = arith.constant 0 : index
    %c9_86 = arith.constant 9 : index
    %c0_87 = arith.constant 0 : index
    %c0_88 = arith.constant 0 : index
    %c0_89 = arith.constant 0 : index
    %47 = vector.load %arg3[%c0_85, %c9_86, %c0_87, %c0_88, %c0_89] : memref<1x16x1x4x16xf32, #tpu.memory_space<vmem>>, vector<1x1x1x4x16xf32>
    %48 = vector.shape_cast %47 : vector<1x1x1x4x16xf32> to vector<4x16xf32>
    %49 = vector.shape_cast %46 : vector<4x16xf32> to vector<1x1x1x4x16xf32>
    tpu.vector_store %arg3[%c0_85, %c9_86, %c0_87, %c0_88, %c0_89], %49 {strides = array<i32>} : memref<1x16x1x4x16xf32, #tpu.memory_space<vmem>>, vector<1x1x1x4x16xf32>,
    %c0_90 = arith.constant 0 : index
    %c0_91 = arith.constant 0 : index
    %c0_92 = arith.constant 0 : index
    %c10 = arith.constant 10 : index
    %c0_93 = arith.constant 0 : index
    %50 = vector.load %arg2[%c0_90, %c0_91, %c0_92, %c10, %c0_93] : memref<1x4x1x16x16xf32, #tpu.memory_space<vmem>>, vector<1x4x1x1x16xf32>
    %51 = vector.shape_cast %50 : vector<1x4x1x1x16xf32> to vector<4x16xf32>
    %c0_94 = arith.constant 0 : index
    %c10_95 = arith.constant 10 : index
    %c0_96 = arith.constant 0 : index
    %c0_97 = arith.constant 0 : index
    %c0_98 = arith.constant 0 : index
    %52 = vector.load %arg3[%c0_94, %c10_95, %c0_96, %c0_97, %c0_98] : memref<1x16x1x4x16xf32, #tpu.memory_space<vmem>>, vector<1x1x1x4x16xf32>
    %53 = vector.shape_cast %52 : vector<1x1x1x4x16xf32> to vector<4x16xf32>
    %54 = vector.shape_cast %51 : vector<4x16xf32> to vector<1x1x1x4x16xf32>
    tpu.vector_store %arg3[%c0_94, %c10_95, %c0_96, %c0_97, %c0_98], %54 {strides = array<i32>} : memref<1x16x1x4x16xf32, #tpu.memory_space<vmem>>, vector<1x1x1x4x16xf32>,
    %c0_99 = arith.constant 0 : index
    %c0_100 = arith.constant 0 : index
    %c0_101 = arith.constant 0 : index
    %c11 = arith.constant 11 : index
    %c0_102 = arith.constant 0 : index
    %55 = vector.load %arg2[%c0_99, %c0_100, %c0_101, %c11, %c0_102] : memref<1x4x1x16x16xf32, #tpu.memory_space<vmem>>, vector<1x4x1x1x16xf32>
    %56 = vector.shape_cast %55 : vector<1x4x1x1x16xf32> to vector<4x16xf32>
    %c0_103 = arith.constant 0 : index
    %c11_104 = arith.constant 11 : index
    %c0_105 = arith.constant 0 : index
    %c0_106 = arith.constant 0 : index
    %c0_107 = arith.constant 0 : index
    %57 = vector.load %arg3[%c0_103, %c11_104, %c0_105, %c0_106, %c0_107] : memref<1x16x1x4x16xf32, #tpu.memory_space<vmem>>, vector<1x1x1x4x16xf32>
    %58 = vector.shape_cast %57 : vector<1x1x1x4x16xf32> to vector<4x16xf32>
    %59 = vector.shape_cast %56 : vector<4x16xf32> to vector<1x1x1x4x16xf32>
    tpu.vector_store %arg3[%c0_103, %c11_104, %c0_105, %c0_106, %c0_107], %59 {strides = array<i32>} : memref<1x16x1x4x16xf32, #tpu.memory_space<vmem>>, vector<1x1x1x4x16xf32>,
    %c0_108 = arith.constant 0 : index
    %c0_109 = arith.constant 0 : index
    %c0_110 = arith.constant 0 : index
    %c12 = arith.constant 12 : index
    %c0_111 = arith.constant 0 : index
    %60 = vector.load %arg2[%c0_108, %c0_109, %c0_110, %c12, %c0_111] : memref<1x4x1x16x16xf32, #tpu.memory_space<vmem>>, vector<1x4x1x1x16xf32>
    %61 = vector.shape_cast %60 : vector<1x4x1x1x16xf32> to vector<4x16xf32>
    %c0_112 = arith.constant 0 : index
    %c12_113 = arith.constant 12 : index
    %c0_114 = arith.constant 0 : index
    %c0_115 = arith.constant 0 : index
    %c0_116 = arith.constant 0 : index
    %62 = vector.load %arg3[%c0_112, %c12_113, %c0_114, %c0_115, %c0_116] : memref<1x16x1x4x16xf32, #tpu.memory_space<vmem>>, vector<1x1x1x4x16xf32>
    %63 = vector.shape_cast %62 : vector<1x1x1x4x16xf32> to vector<4x16xf32>
    %64 = vector.shape_cast %61 : vector<4x16xf32> to vector<1x1x1x4x16xf32>
    tpu.vector_store %arg3[%c0_112, %c12_113, %c0_114, %c0_115, %c0_116], %64 {strides = array<i32>} : memref<1x16x1x4x16xf32, #tpu.memory_space<vmem>>, vector<1x1x1x4x16xf32>,
    %c0_117 = arith.constant 0 : index
    %c0_118 = arith.constant 0 : index
    %c0_119 = arith.constant 0 : index
    %c13 = arith.constant 13 : index
    %c0_120 = arith.constant 0 : index
    %65 = vector.load %arg2[%c0_117, %c0_118, %c0_119, %c13, %c0_120] : memref<1x4x1x16x16xf32, #tpu.memory_space<vmem>>, vector<1x4x1x1x16xf32>
    %66 = vector.shape_cast %65 : vector<1x4x1x1x16xf32> to vector<4x16xf32>
    %c0_121 = arith.constant 0 : index
    %c13_122 = arith.constant 13 : index
    %c0_123 = arith.constant 0 : index
    %c0_124 = arith.constant 0 : index
    %c0_125 = arith.constant 0 : index
    %67 = vector.load %arg3[%c0_121, %c13_122, %c0_123, %c0_124, %c0_125] : memref<1x16x1x4x16xf32, #tpu.memory_space<vmem>>, vector<1x1x1x4x16xf32>
    %68 = vector.shape_cast %67 : vector<1x1x1x4x16xf32> to vector<4x16xf32>
    %69 = vector.shape_cast %66 : vector<4x16xf32> to vector<1x1x1x4x16xf32>
    tpu.vector_store %arg3[%c0_121, %c13_122, %c0_123, %c0_124, %c0_125], %69 {strides = array<i32>} : memref<1x16x1x4x16xf32, #tpu.memory_space<vmem>>, vector<1x1x1x4x16xf32>,
    %c0_126 = arith.constant 0 : index
    %c0_127 = arith.constant 0 : index
    %c0_128 = arith.constant 0 : index
    %c14 = arith.constant 14 : index
    %c0_129 = arith.constant 0 : index
    %70 = vector.load %arg2[%c0_126, %c0_127, %c0_128, %c14, %c0_129] : memref<1x4x1x16x16xf32, #tpu.memory_space<vmem>>, vector<1x4x1x1x16xf32>
    %71 = vector.shape_cast %70 : vector<1x4x1x1x16xf32> to vector<4x16xf32>
    %c0_130 = arith.constant 0 : index
    %c14_131 = arith.constant 14 : index
    %c0_132 = arith.constant 0 : index
    %c0_133 = arith.constant 0 : index
    %c0_134 = arith.constant 0 : index
    %72 = vector.load %arg3[%c0_130, %c14_131, %c0_132, %c0_133, %c0_134] : memref<1x16x1x4x16xf32, #tpu.memory_space<vmem>>, vector<1x1x1x4x16xf32>
    %73 = vector.shape_cast %72 : vector<1x1x1x4x16xf32> to vector<4x16xf32>
    %74 = vector.shape_cast %71 : vector<4x16xf32> to vector<1x1x1x4x16xf32>
    tpu.vector_store %arg3[%c0_130, %c14_131, %c0_132, %c0_133, %c0_134], %74 {strides = array<i32>} : memref<1x16x1x4x16xf32, #tpu.memory_space<vmem>>, vector<1x1x1x4x16xf32>,
    %c0_135 = arith.constant 0 : index
    %c0_136 = arith.constant 0 : index
    %c0_137 = arith.constant 0 : index
    %c15 = arith.constant 15 : index
    %c0_138 = arith.constant 0 : index
    %75 = vector.load %arg2[%c0_135, %c0_136, %c0_137, %c15, %c0_138] : memref<1x4x1x16x16xf32, #tpu.memory_space<vmem>>, vector<1x4x1x1x16xf32>
    %76 = vector.shape_cast %75 : vector<1x4x1x1x16xf32> to vector<4x16xf32>
    %c0_139 = arith.constant 0 : index
    %c15_140 = arith.constant 15 : index
    %c0_141 = arith.constant 0 : index
    %c0_142 = arith.constant 0 : index
    %c0_143 = arith.constant 0 : index
    %77 = vector.load %arg3[%c0_139, %c15_140, %c0_141, %c0_142, %c0_143] : memref<1x16x1x4x16xf32, #tpu.memory_space<vmem>>, vector<1x1x1x4x16xf32>
    %78 = vector.shape_cast %77 : vector<1x1x1x4x16xf32> to vector<4x16xf32>
    %79 = vector.shape_cast %76 : vector<4x16xf32> to vector<1x1x1x4x16xf32>
    tpu.vector_store %arg3[%c0_139, %c15_140, %c0_141, %c0_142, %c0_143], %79 {strides = array<i32>} : memref<1x16x1x4x16xf32, #tpu.memory_space<vmem>>, vector<1x1x1x4x16xf32>,
    return
  }
  func.func @transform_0(%arg0: i32, %arg1: i32) -> (i32, i32, i32, i32, i32) {
    %c0_i32 = arith.constant 0 : i32
    %c0_i32_0 = arith.constant 0 : i32
    %c0_i32_1 = arith.constant 0 : i32
    %c0_i32_2 = arith.constant 0 : i32
    return %arg0, %c0_i32, %arg1, %c0_i32_0, %c0_i32_1 : i32, i32, i32, i32, i32
  }
  func.func @transform_1(%arg0: i32, %arg1: i32) -> (i32, i32, i32, i32, i32) {
    %c0_i32 = arith.constant 0 : i32
    %c0_i32_0 = arith.constant 0 : i32
    %c0_i32_1 = arith.constant 0 : i32
    %c0_i32_2 = arith.constant 0 : i32
    return %arg0, %c0_i32, %arg1, %c0_i32_0, %c0_i32_1 : i32, i32, i32, i32, i32
  }
}

</mosaic_0001>

<bundles_post_ra>
// kernel: tpu_custom_call.1
= control target key start
LH: loop header
LB: loop body
LE: loop exit
PB: predicated region body
PF: predicated region fallthrough
CT: control target
= control target key end

     0   :  { %6 = vsyncpa [#allocation3], 0  ;;  %s1085_s0 = inlined_call_operand.hbm [shape: f32[2,4,1,16,16], index: 0, kind: input, shape index: {}]   ;;  %s1086_s1 = inlined_call_operand.hbm [shape: f32[2,16,1,4,16], index: 1, kind: output, shape index: {}]  }
   0x1   :  { %8 = vsyncpa [#allocation3 + $0x1], 0 }
   0x2   :  { %9 = vsyncpa [#allocation4], 0 }
   0x3   :  { %11 = vsyncpa [#allocation4 + $0x1], 0  ;;  %s757_s6 = smov 0   ;;  %s759_s7 = smov 0  }
   0x4   :  { %s761_s8 = smov 0   ;;  %s763_s9 = smov 0  }
   0x5   :  { %s765_s10 = smov 0   ;;  %s767_s11 = smov 0  }
   0x6 LB: > { %s529_s12 = sadd.s32 4294967295, %s739_s11   ;;  %s530_s13 = sadd.s32 4294967294, %s739_s11   ;;  %s739_s11 = sphi %s767_s11, %s17_s11   ;;  %s735_s10 = sphi %s765_s10, %s1101_s10   ;;  %s731_s9 = sphi %s763_s9, %s1100_s9   ;;  %s727_s8 = sphi %s761_s8, %s1099_s8   ;;  %s723_s7 = sphi %s759_s7, %s1098_s7   ;;  %s719_s6 = sphi %s757_s6, %s1097_s6  }
   0x7   : > { %s29_s14 = sadd.s32 1, %s735_s10  ;;  %s38_s15 = sadd.s32 1, %s727_s8 }
   0x8   : > { %p31_p0 = scmp.ge.s32.totalorder %s29_s14, 2  ;;  %p45_p1 = scmp.ne.s32.totalorder %s727_s8, %s723_s7 }
   0x9   : > { %p46_p2 = scmp.eq.s32.totalorder %s739_s11, 0  ;;  %p51_p3 = scmp.ne.s32.totalorder %s723_s7, %s719_s6 }
   0xa   : > { %s1103_s14 = smov (%p31_p0, %s29_s14), 0  ;;  %p52_p5 = scmp.eq.s32.totalorder %s529_s12, 0 }
   0xb   : > { %p798_p4 = por %p46_p2, %p45_p1  ;;  %s33_s17 = ssub.s32 %s735_s10, %s1103_s14 }
   0xc   : > { %p77_p6 = scmp.eq.s32.totalorder %s529_s12, 1  ;;  %p36_p7 = scmp.eq.s32.totalorder %s33_s17, 0 }
   0xd   : > { %p804_p8 = por %p52_p5, %p51_p3  ;;  %p83_p10 = scmp.eq.s32.totalorder %s530_s13, 1 }
   0xe   : > { %p808_p9 = por %p77_p6, %p45_p1  ;;  %p573_p13 = scmp.lt.s32.totalorder %s739_s11, 2 }
   0xf   : > { %s813_s20 = scalar_select %p36_p7, %s727_s8, %s38_s15  }
  0x10   : > { %s1090_s19 = scalar_select %p808_p9, 1, 0 }
  0x11   : > { %p815_p11 = por %p83_p10, %p51_p3  ;;  %s103_s22 = sand.u32 1, %s727_s8  }
  0x12   : > { %s533_s23 = sshll.u32 %s103_s22, 6  ;;  %s559_s24 = sshll.u32 %s735_s10, 10 }
  0x13   : > { %s1091_s21 = scalar_select %p815_p11, 1, 0 }
  0x14   : > { %s826_s27 = scalar_lea.hbm %s1085_s0, %s559_s24  ;;  %s107_s28 = scalar_lea.vmem [#allocation2], %s533_s23 }
  0x15   : > { %s116_s29 = sshll.u32 %s107_s28, 4  ;;  %p832_p0 = pnand %p573_p13, %p798_p4  ;;  %s828_s29 = int_to_ptr.vmem [resolvable:$true] %s116_s29 }
  0x16   : > { %s837_s2 = scalar_lea.sflag [#allocation3], %s103_s22  ;;  %s627_s3 = scalar_lea.hbm %s826_s27, 1024 }
  0x17   : > { %p628_p2 = scmp.ne.s32.totalorder %s826_s27, %s627_s3  ;;  %p629_p3 = pneg %p832_p0 }
  0x18   : > { %s632_s12 = scalar_lea.hbm %s1085_s0, 2048  ;;  %p633_p4 = scmp.lt.u32.totalorder %s826_s27, %s1085_s0 }
  0x19   : > { %p630_p5 = pnand %p629_p3, %p628_p2  ;;  %p634_p7 = scmp.lt.u32.totalorder %s632_s12, %s627_s3 }
  0x1a   : > { %p636_p13 = scmp.lt.u32.totalorder %s627_s3, %s826_s27 }
  0x1b   : > { %p631_p6 = pneg %p630_p5  ;;  %p635_p10 = por %p634_p7, %p633_p4 }
  0x1d   : > { %p637_p12 = por %p636_p13, %p635_p10 }
  0x1f   : > { %p638_p1 = pnand %p637_p12, %p631_p6 }
  0x21   : > { %641 = shalt.err (!%p638_p1)
}
  0x22   : > { %s642_s16 = scalar_lea.vmem %s828_s29, 1024  ;;  %s741_s17 = smov [#allocation2]  }
  0x23   : > { %p643_p2 = scmp.ne.s32.totalorder %s828_s29, %s642_s16  ;;  %s647_s22 = sshll.u32 %s741_s17, 4  ;;  %s648_s22 = int_to_ptr.vmem [resolvable:$false] %s647_s22 }
  0x24   : > { %s649_s23 = scalar_lea.vmem %s648_s22, 2048  ;;  %p650_p9 = scmp.lt.s32.totalorder %s828_s29, %s648_s22 }
  0x25   : > { %p645_p5 = pnand %p643_p2, %p629_p3  ;;  %p651_p4 = scmp.lt.s32.totalorder %s649_s23, %s642_s16 }
  0x27   : > { %p646_p11 = pneg %p645_p5  ;;  %p652_p7 = por %p651_p4, %p650_p9 }
  0x29   : > { %p653_p10 = pnand %p652_p7, %p646_p11 }
  0x2b   : > { %656 = shalt.err (!%p653_p10)
}
  0x2c   : > { %s742_s24 = smov 128   ;;  %s743_s25 = smov 8  }
  0x2d   : > { %568 = dma.hbm_to_vmem [thread:$0]  (!%p832_p0), %s826_s27, 1024, %s828_s29, %s837_s2, %s742_s24, %s742_s24, %s743_s25  }
  0x2e   : > { %p124_p12 = scmp.lt.s32.totalorder %s739_s11, 3  ;;  %p1093_p1 = scmp.ge.s32.totalorder %s739_s11, 1 }
  0x30   : > { %p125_p3 = pnand %p1093_p1, %p124_p12 }
  0x31   : > { %s869_s26 = sand.u32 (!%p125_p3), 1, %s723_s7  }
  0x32   : > { %128 = sbr.rel (%p125_p3) target bundleno = 114 (0x72), region = 24  ;;  %s537_s28 = sshll.u32 (!%p125_p3), %s869_s26, 6 }
  0x33   : > { %s131_s3 = scalar_lea.sflag (!%p125_p3), [#allocation3], %s869_s26  ;;  %s875_s4 = scalar_lea.vmem (!%p125_p3), [#allocation2], %s537_s28 }
  0x39   : > { %710 = dma.done.wait (%p804_p8), %s131_s3, 1024  }
  0x3a   : > { %712 = vsyncadd (%p804_p8), %s131_s3, 4294966272  ;;  %vm162_vm0 = vcmask 1041409   ;;  %vm165_vm1 = vcmask 1042434   ;;  %vm168_vm2 = vcmask 1043459   ;;  %v153_v0 = vld [vmem:[%s875_s4] sm:$0x1] }
  0x3b   : > { %v154_v1 = vld [vmem:[%s875_s4 + $0x10] sm:$0x1]  ;;  %v155_v2 = vld [vmem:[%s875_s4 + $0x20] sm:$0x1]  ;;  %v173_v6 = vld [vmem:[%s875_s4 + $0x1] sm:$0x1] }
  0x3c   : > { %v156_v3 = vld [vmem:[%s875_s4 + $0x30] sm:$0x1]  ;;  %v161_v4 = vrot.slane %v154_v1, 7  ;;  %v164_v5 = vrot.slane %v155_v2, 6  ;;  %vm171_vm3 = vcmask 125952   ;;  %s900_s18 = scalar_lea.vmem [#allocation5], %s537_s28 }
  0x3d   : > { %v167_v7 = vrot.slane %v156_v3, 5  ;;  %v174_v8 = vld [vmem:[%s875_s4 + $0x11] sm:$0x1]  ;;  %v175_v9 = vld [vmem:[%s875_s4 + $0x21] sm:$0x1]  ;;  %s560_s27 = sshll.u32 %s731_s9, 10 }
  0x3e   : > { %v163_v10 = vsel %vm162_vm0, %v161_v4, %v153_v0  ;;  %v176_v11 = vld [vmem:[%s875_s4 + $0x31] sm:$0x1]  ;;  %v181_v12 = vrot.slane %v174_v8, 7  ;;  %v183_v13 = vrot.slane %v175_v9, 6  ;;  %v190_v14 = vld [vmem:[%s875_s4 + $0x2] sm:$0x1]  ;;  %s1028_s2 = scalar_lea.hbm %s1086_s1, %s560_s27 }
  0x3f   : > { %v166_v15 = vsel %vm165_vm1, %v164_v5, %v163_v10  ;;  %v185_v16 = vrot.slane %v176_v11, 5  ;;  %v191_v17 = vld [vmem:[%s875_s4 + $0x12] sm:$0x1]  ;;  %v192_v18 = vld [vmem:[%s875_s4 + $0x22] sm:$0x1]  ;;  %s443_s29 = sshll.u32 %s900_s18, 4  ;;  %s1030_s29 = int_to_ptr.vmem [resolvable:$true] %s443_s29 }
  0x40   : > { %v169_v19 = vsel %vm168_vm2, %v167_v7, %v166_v15  ;;  %v182_v20 = vsel %vm162_vm0, %v181_v12, %v173_v6  ;;  %v193_v21 = vld [vmem:[%s875_s4 + $0x32] sm:$0x1]  ;;  %v198_v22 = vrot.slane %v191_v17, 7  ;;  %v200_v23 = vrot.slane %v192_v18, 6  ;;  %v207_v24 = vld [vmem:[%s875_s4 + $0x3] sm:$0x1] }
  0x41   : > { %172 = vst.msk [vmem:[%s900_s18] sm:$0xf] %vm171_vm3, %v169_v19  ;;  %v184_v25 = vsel %vm165_vm1, %v183_v13, %v182_v20  ;;  %v202_v26 = vrot.slane %v193_v21, 5  ;;  %v208_v27 = vld [vmem:[%s875_s4 + $0x13] sm:$0x1]  ;;  %s429_s5 = scalar_lea.sflag [#allocation4], %s869_s26 }
  0x42   : > { %v209_v28 = vld [vmem:[%s875_s4 + $0x23] sm:$0x1]  ;;  %v186_v29 = vsel %vm168_vm2, %v185_v16, %v184_v25  ;;  %v199_v30 = vsel %vm162_vm0, %v198_v22, %v190_v14  ;;  %v210_v31 = vld [vmem:[%s875_s4 + $0x33] sm:$0x1]  ;;  %v215_v32 = vrot.slane %v208_v27, 7  ;;  %s657_s12 = scalar_lea.vmem %s1030_s29, 1024 }
  0x43   : > { %v217_v33 = vrot.slane %v209_v28, 6  ;;  %v224_v34 = vld [vmem:[%s875_s4 + $0x4] sm:$0x1]  ;;  %539 = vst.msk [vmem:[%s900_s18 + $0x4] sm:$0xf] %vm171_vm3, %v186_v29  ;;  %v201_v35 = vsel %vm165_vm1, %v200_v23, %v199_v30  ;;  %v219_v36 = vrot.slane %v210_v31, 5  ;;  %p658_p8 = scmp.ne.s32.totalorder %s1030_s29, %s657_s12 }
  0x44   : > { %v225_v37 = vld [vmem:[%s875_s4 + $0x14] sm:$0x1]  ;;  %v226_v38 = vld [vmem:[%s875_s4 + $0x24] sm:$0x1]  ;;  %v203_v39 = vsel %vm168_vm2, %v202_v26, %v201_v35  ;;  %v216_v40 = vsel %vm162_vm0, %v215_v32, %v207_v24  ;;  %v241_v44 = vld [vmem:[%s875_s4 + $0x5] sm:$0x1] }
  0x45   : > { %v227_v41 = vld [vmem:[%s875_s4 + $0x34] sm:$0x1]  ;;  %v232_v42 = vrot.slane %v225_v37, 7  ;;  %v234_v43 = vrot.slane %v226_v38, 6  ;;  %540 = vst.msk [vmem:[%s900_s18 + $0x8] sm:$0xf] %vm171_vm3, %v203_v39  ;;  %v218_v45 = vsel %vm165_vm1, %v217_v33, %v216_v40 }
  0x46   : > { %v236_v46 = vrot.slane %v227_v41, 5  ;;  %v242_v47 = vld [vmem:[%s875_s4 + $0x15] sm:$0x1]  ;;  %v243_v48 = vld [vmem:[%s875_s4 + $0x25] sm:$0x1]  ;;  %v220_v49 = vsel %vm168_vm2, %v219_v36, %v218_v45  ;;  %p1094_p9 = scmp.ne.s32.totalorder %s1090_s19, 0 }
  0x47   : > { %v233_v50 = vsel %vm162_vm0, %v232_v42, %v224_v34  ;;  %v244_v51 = vld [vmem:[%s875_s4 + $0x35] sm:$0x1]  ;;  %v249_v52 = vrot.slane %v242_v47, 7  ;;  %v251_v53 = vrot.slane %v243_v48, 6  ;;  %v258_v54 = vld [vmem:[%s875_s4 + $0x6] sm:$0x1] }
  0x48   : > { %541 = vst.msk [vmem:[%s900_s18 + $0xc] sm:$0xf] %vm171_vm3, %v220_v49  ;;  %v235_v55 = vsel %vm165_vm1, %v234_v43, %v233_v50  ;;  %v253_v56 = vrot.slane %v244_v51, 5  ;;  %v259_v57 = vld [vmem:[%s875_s4 + $0x16] sm:$0x1]  ;;  %p659_p11 = pnand %p658_p8, %p1094_p9  ;;  %s744_s13 = smov [#allocation5]  }
  0x49   : > { %v260_v58 = vld [vmem:[%s875_s4 + $0x26] sm:$0x1]  ;;  %v237_v59 = vsel %vm168_vm2, %v236_v46, %v235_v55  ;;  %v250_v60 = vsel %vm162_vm0, %v249_v52, %v241_v44  ;;  %v261_v61 = vld [vmem:[%s875_s4 + $0x36] sm:$0x1]  ;;  %v266_v62 = vrot.slane %v259_v57, 7  ;;  %s661_s15 = sshll.u32 %s744_s13, 4  ;;  %s662_s15 = int_to_ptr.vmem [resolvable:$false] %s661_s15 }
  0x4a   : > { %v268_v63 = vrot.slane %v260_v58, 6  ;;  %v275_v0 = vld [vmem:[%s875_s4 + $0x7] sm:$0x1]  ;;  %542 = vst.msk [vmem:[%s900_s18 + $0x10] sm:$0xf] %vm171_vm3, %v237_v59  ;;  %v252_v1 = vsel %vm165_vm1, %v251_v53, %v250_v60  ;;  %v270_v2 = vrot.slane %v261_v61, 5  ;;  %p660_p0 = pneg %p659_p11  ;;  %p664_p6 = scmp.lt.s32.totalorder %s1030_s29, %s662_s15 }
  0x4b   : > { %v276_v3 = vld [vmem:[%s875_s4 + $0x17] sm:$0x1]  ;;  %v277_v4 = vld [vmem:[%s875_s4 + $0x27] sm:$0x1]  ;;  %v254_v5 = vsel %vm168_vm2, %v253_v56, %v252_v1  ;;  %v267_v6 = vsel %vm162_vm0, %v266_v62, %v258_v54  ;;  %v292_v10 = vld [vmem:[%s875_s4 + $0x8] sm:$0x1] }
  0x4c   : > { %v278_v7 = vld [vmem:[%s875_s4 + $0x37] sm:$0x1]  ;;  %v283_v8 = vrot.slane %v276_v3, 7  ;;  %v285_v9 = vrot.slane %v277_v4, 6  ;;  %543 = vst.msk [vmem:[%s900_s18 + $0x14] sm:$0xf] %vm171_vm3, %v254_v5  ;;  %v269_v11 = vsel %vm165_vm1, %v268_v63, %v267_v6 }
  0x4d   : > { %v287_v12 = vrot.slane %v278_v7, 5  ;;  %v293_v13 = vld [vmem:[%s875_s4 + $0x18] sm:$0x1]  ;;  %v294_v14 = vld [vmem:[%s875_s4 + $0x28] sm:$0x1]  ;;  %v271_v15 = vsel %vm168_vm2, %v270_v2, %v269_v11  ;;  %s663_s16 = scalar_lea.vmem %s662_s15, 2048 }
  0x4e   : > { %v284_v16 = vsel %vm162_vm0, %v283_v8, %v275_v0  ;;  %v295_v17 = vld [vmem:[%s875_s4 + $0x38] sm:$0x1]  ;;  %v300_v18 = vrot.slane %v293_v13, 7  ;;  %v302_v19 = vrot.slane %v294_v14, 6  ;;  %v309_v20 = vld [vmem:[%s875_s4 + $0x9] sm:$0x1]  ;;  %p665_p13 = scmp.lt.s32.totalorder %s663_s16, %s657_s12 }
  0x4f   : > { %544 = vst.msk [vmem:[%s900_s18 + $0x18] sm:$0xf] %vm171_vm3, %v271_v15  ;;  %v286_v21 = vsel %vm165_vm1, %v285_v9, %v284_v16  ;;  %v304_v22 = vrot.slane %v295_v17, 5  ;;  %v310_v23 = vld [vmem:[%s875_s4 + $0x19] sm:$0x1] }
  0x50   : > { %v311_v24 = vld [vmem:[%s875_s4 + $0x29] sm:$0x1]  ;;  %v288_v25 = vsel %vm168_vm2, %v287_v12, %v286_v21  ;;  %v301_v26 = vsel %vm162_vm0, %v300_v18, %v292_v10  ;;  %v312_v27 = vld [vmem:[%s875_s4 + $0x39] sm:$0x1]  ;;  %v317_v28 = vrot.slane %v310_v23, 7  ;;  %p666_p2 = por %p665_p13, %p664_p6 }
  0x51   : > { %v319_v29 = vrot.slane %v311_v24, 6  ;;  %v326_v30 = vld [vmem:[%s875_s4 + $0xa] sm:$0x1]  ;;  %545 = vst.msk [vmem:[%s900_s18 + $0x1c] sm:$0xf] %vm171_vm3, %v288_v25  ;;  %v303_v31 = vsel %vm165_vm1, %v302_v19, %v301_v26  ;;  %v321_v32 = vrot.slane %v312_v27, 5 }
  0x52   : > { %v327_v33 = vld [vmem:[%s875_s4 + $0x1a] sm:$0x1]  ;;  %v328_v34 = vld [vmem:[%s875_s4 + $0x2a] sm:$0x1]  ;;  %v305_v35 = vsel %vm168_vm2, %v304_v22, %v303_v31  ;;  %v318_v36 = vsel %vm162_vm0, %v317_v28, %v309_v20  ;;  %v343_v40 = vld [vmem:[%s875_s4 + $0xb] sm:$0x1]  ;;  %p667_p5 = pnand %p666_p2, %p660_p0 }
  0x53   : > { %v329_v37 = vld [vmem:[%s875_s4 + $0x3a] sm:$0x1]  ;;  %v334_v38 = vrot.slane %v327_v33, 7  ;;  %v336_v39 = vrot.slane %v328_v34, 6  ;;  %546 = vst.msk [vmem:[%s900_s18 + $0x20] sm:$0xf] %vm171_vm3, %v305_v35  ;;  %v320_v41 = vsel %vm165_vm1, %v319_v29, %v318_v36 }
  0x54   : > { %v338_v42 = vrot.slane %v329_v37, 5  ;;  %v344_v43 = vld [vmem:[%s875_s4 + $0x1b] sm:$0x1]  ;;  %v345_v44 = vld [vmem:[%s875_s4 + $0x2b] sm:$0x1]  ;;  %v322_v45 = vsel %vm168_vm2, %v321_v32, %v320_v41 }
  0x55   : > { %v335_v46 = vsel %vm162_vm0, %v334_v38, %v326_v30  ;;  %v346_v47 = vld [vmem:[%s875_s4 + $0x3b] sm:$0x1]  ;;  %v351_v48 = vrot.slane %v344_v43, 7  ;;  %v353_v49 = vrot.slane %v345_v44, 6  ;;  %v360_v50 = vld [vmem:[%s875_s4 + $0xc] sm:$0x1] }
  0x56   : > { %547 = vst.msk [vmem:[%s900_s18 + $0x24] sm:$0xf] %vm171_vm3, %v322_v45  ;;  %v337_v51 = vsel %vm165_vm1, %v336_v39, %v335_v46  ;;  %v355_v52 = vrot.slane %v346_v47, 5  ;;  %v361_v53 = vld [vmem:[%s875_s4 + $0x1c] sm:$0x1] }
  0x57   : > { %v362_v54 = vld [vmem:[%s875_s4 + $0x2c] sm:$0x1]  ;;  %v339_v55 = vsel %vm168_vm2, %v338_v42, %v337_v51  ;;  %v352_v56 = vsel %vm162_vm0, %v351_v48, %v343_v40  ;;  %v363_v57 = vld [vmem:[%s875_s4 + $0x3c] sm:$0x1]  ;;  %v368_v58 = vrot.slane %v361_v53, 7 }
  0x58   : > { %v370_v59 = vrot.slane %v362_v54, 6  ;;  %v377_v60 = vld [vmem:[%s875_s4 + $0xd] sm:$0x1]  ;;  %548 = vst.msk [vmem:[%s900_s18 + $0x28] sm:$0xf] %vm171_vm3, %v339_v55  ;;  %v354_v61 = vsel %vm165_vm1, %v353_v49, %v352_v56  ;;  %v372_v62 = vrot.slane %v363_v57, 5 }
  0x59   : > { %v378_v63 = vld [vmem:[%s875_s4 + $0x1d] sm:$0x1]  ;;  %v379_v0 = vld [vmem:[%s875_s4 + $0x2d] sm:$0x1]  ;;  %v356_v1 = vsel %vm168_vm2, %v355_v52, %v354_v61  ;;  %v369_v2 = vsel %vm162_vm0, %v368_v58, %v360_v50  ;;  %v394_v6 = vld [vmem:[%s875_s4 + $0xe] sm:$0x1] }
  0x5a   : > { %v380_v3 = vld [vmem:[%s875_s4 + $0x3d] sm:$0x1]  ;;  %v385_v4 = vrot.slane %v378_v63, 7  ;;  %v387_v5 = vrot.slane %v379_v0, 6  ;;  %549 = vst.msk [vmem:[%s900_s18 + $0x2c] sm:$0xf] %vm171_vm3, %v356_v1  ;;  %v371_v7 = vsel %vm165_vm1, %v370_v59, %v369_v2 }
  0x5b   : > { %v389_v8 = vrot.slane %v380_v3, 5  ;;  %v395_v9 = vld [vmem:[%s875_s4 + $0x1e] sm:$0x1]  ;;  %v396_v10 = vld [vmem:[%s875_s4 + $0x2e] sm:$0x1]  ;;  %v373_v11 = vsel %vm168_vm2, %v372_v62, %v371_v7 }
  0x5c   : > { %v386_v12 = vsel %vm162_vm0, %v385_v4, %v377_v60  ;;  %v397_v13 = vld [vmem:[%s875_s4 + $0x3e] sm:$0x1]  ;;  %v402_v14 = vrot.slane %v395_v9, 7  ;;  %v404_v15 = vrot.slane %v396_v10, 6  ;;  %v411_v16 = vld [vmem:[%s875_s4 + $0xf] sm:$0x1] }
  0x5d   : > { %550 = vst.msk [vmem:[%s900_s18 + $0x30] sm:$0xf] %vm171_vm3, %v373_v11  ;;  %v388_v17 = vsel %vm165_vm1, %v387_v5, %v386_v12  ;;  %v406_v18 = vrot.slane %v397_v13, 5  ;;  %v412_v19 = vld [vmem:[%s875_s4 + $0x1f] sm:$0x1] }
  0x5e   : > { %v413_v20 = vld [vmem:[%s875_s4 + $0x2f] sm:$0x1]  ;;  %v390_v21 = vsel %vm168_vm2, %v389_v8, %v388_v17  ;;  %v403_v22 = vsel %vm162_vm0, %v402_v14, %v394_v6  ;;  %v414_v23 = vld [vmem:[%s875_s4 + $0x3f] sm:$0x1]  ;;  %v419_v24 = vrot.slane %v412_v19, 7 }
  0x5f   : > { %v421_v25 = vrot.slane %v413_v20, 6  ;;  %551 = vst.msk [vmem:[%s900_s18 + $0x34] sm:$0xf] %vm171_vm3, %v390_v21  ;;  %v405_v26 = vsel %vm165_vm1, %v404_v15, %v403_v22  ;;  %v423_v27 = vrot.slane %v414_v23, 5 }
  0x60   : > { %v407_v28 = vsel %vm168_vm2, %v406_v18, %v405_v26  ;;  %v420_v29 = vsel %vm162_vm0, %v419_v24, %v411_v16 }
  0x61   : > { %552 = vst.msk [vmem:[%s900_s18 + $0x38] sm:$0xf] %vm171_vm3, %v407_v28  ;;  %v422_v30 = vsel %vm165_vm1, %v421_v25, %v420_v29 }
  0x62   : > { %v424_v31 = vsel %vm168_vm2, %v423_v27, %v422_v30 }
  0x63   : > { %553 = vst.msk [vmem:[%s900_s18 + $0x3c] sm:$0xf] %vm171_vm3, %v424_v31 }
  0x64   : > { %670 = shalt.err (!%p667_p5)
}
  0x65   : > { %s671_s17 = scalar_lea.hbm %s1028_s2, 1024  ;;  %s675_s24 = scalar_lea.hbm %s1086_s1, 2048 }
  0x66   : > { %p672_p4 = scmp.ne.s32.totalorder %s1028_s2, %s671_s17  ;;  %p676_p12 = scmp.lt.u32.totalorder %s1028_s2, %s1086_s1 }
  0x67   : > { %p677_p1 = scmp.lt.u32.totalorder %s675_s24, %s671_s17  ;;  %p679_p8 = scmp.lt.u32.totalorder %s671_s17, %s1028_s2 }
  0x68   : > { %p673_p7 = pnand %p672_p4, %p1094_p9 }
  0x69   : > { %p678_p3 = por %p677_p1, %p676_p12 }
  0x6a   : > { %p674_p10 = pneg %p673_p7 }
  0x6b   : > { %p680_p11 = por %p679_p8, %p678_p3 }
  0x6d   : > { %p681_p0 = pnand %p680_p11, %p674_p10 }
  0x6f   : > { %684 = shalt.err (!%p681_p0)
}
  0x70   : > { %s745_s3 = smov 64   ;;  %s746_s4 = smov 4  }
  0x71   : > { %563 = dma.vmem_to_hbm [thread:$0]  (%p1094_p9), %s1030_s29, 1024, %s1028_s2, %s429_s5, %s745_s3, %s745_s3, %s746_s4  }
  0x72 PF: > { %s458_s18 = sand.u32 1, %s719_s6   ;;  %p1095_p6 = scmp.ne.s32.totalorder %s1091_s21, 0 }
  0x73   : > { %p1096_p13 = scmp.ge.s32.totalorder %s739_s11, 2  ;;  %s459_s27 = scalar_lea.sflag [#allocation4], %s458_s18 }
  0x75   : > { %p570_p2 = pnand %p1096_p13, %p1095_p6 }
  0x77   : > { %714 = dma.done.wait (!%p570_p2), %s459_s27, 1024  }
  0x78   : > { %716 = vsyncadd (!%p570_p2), %s459_s27, 4294966272  ;;  %s17_s11 = sadd.s32 1, %s739_s11   ;;  %s1097_s6 = smov %s723_s7 }
  0x79   : > { %p14_p5 = scmp.ge.s32.totalorder %s17_s11, 4   ;;  %s1098_s7 = smov %s727_s8 }
  0x7a   : > { %s1099_s8 = smov %s813_s20  ;;  %s1100_s9 = smov %s735_s10 }
  0x7b   : > { %s1101_s10 = smov %s1103_s14  ;;  %16 = sbr.rel (!%p14_p5) target bundleno = 6 (0x6), region = 84 }
  0x82   :  { %464 = vsyncpa [#allocation3], 1 }
  0x83   :  { %466 = vsyncpa [#allocation3 + $0x1], 1 }
  0x84   :  { %467 = vsyncpa [#allocation4], 1 }
  0x85   :  { %469 = vsyncpa [#allocation4 + $0x1], 1 }

</bundles_post_ra>
